<compile_context>
chip_gen: v7x
topology: tpu7x:2x2x1
jax: 0.10.0
libtpu: 0.0.40
codegen_flags: <defaults>
</compile_context>

<pallas_src>
import functools

import jax
import jax.numpy as jnp
from jax.experimental import pallas as pl
from jax.experimental.pallas import tpu as pltpu

_MIB = 1024 * 1024


def attn_kernel(x_ref, wqkv_ref, wproj_ref, bproj_ref, o_ref, *,
                num_heads, compute_dtype, approx_recip):
    """Fused MHA forward for a block of `Bt` batch elements.

    x_ref:     (Bt, N, C)   activations (compute_dtype)
    wqkv_ref:  (C, 3C)      QKV weight (softmax scale pre-folded into the Q columns)
    wproj_ref: (C, C)       output projection weight
    bproj_ref: (1, C)       output projection bias (f32)
    o_ref:     (Bt, N, C)   output
    """
    Bt, N, C = x_ref.shape
    H = num_heads
    hd = C // H
    cdt = compute_dtype

    # ---- fused QKV projection: one big MXU matmul over all Bt*N rows (K=C, N=3C) ----
    x2d = x_ref[...].reshape(Bt * N, C)
    qkv = jnp.dot(x2d, wqkv_ref[...], preferred_element_type=jnp.float32)   # (Bt*N, 3C)
    # Cast ONCE: all subsequent relayouts / copies of q, k, v move compute_dtype.
    qkv = qkv.astype(cdt)

    # ---- head regrouping: (Bt*N, 3C) -> (H*Bt, N, hd) per operand --------------------
    # NOTE(review #1): the pure-reshape 'bqhd,bkhd->bhqk' form needs non-leading batch
    # dims in dot_general / a (0,2,1,3) transpose, which Mosaic doesn't lower; this
    # stack is the cheapest known-lowering relayout and now runs on cdt data.
    def split_heads(base):
        parts = [qkv[:, base + h * hd: base + (h + 1) * hd] for h in range(H)]
        return jnp.stack(parts, axis=0).reshape(H * Bt, N, hd)

    q = split_heads(0)          # softmax scale already folded into the Q weight columns
    k = split_heads(C)
    v = split_heads(2 * C)

    # ---- batched attention: leading-batch einsums on the MXU, softmax stats in f32 ---
    s = jnp.einsum('bqd,bkd->bqk', q, k, preferred_element_type=jnp.float32)  # (H*Bt,N,N)
    s = s - jnp.max(s, axis=-1, keepdims=True)
    p = jnp.exp(s)
    denom = jnp.sum(p, axis=-1, keepdims=True)                                # (H*Bt,N,1)
    ctx = jnp.einsum('bqk,bkd->bqd', p.astype(cdt), v,
                     preferred_element_type=jnp.float32)                      # (H*Bt,N,hd)
    # Normalize AFTER the PV matmul: the multiply runs on (N, hd), not (N, N).
    inv = pl.reciprocal(denom, approx=True) if approx_recip else 1.0 / denom
    ctx = (ctx * inv).astype(cdt)

    # ---- heads -> channel lanes (cdt relayout), then the fused output projection -----
    ctx = ctx.reshape(H, Bt * N, hd)
    ctx2d = jnp.concatenate([ctx[h] for h in range(H)], axis=-1)              # (Bt*N, C)
    out = jnp.dot(ctx2d, wproj_ref[...],
                  preferred_element_type=jnp.float32) + bproj_ref[...]
    o_ref[...] = out.reshape(Bt, N, C).astype(o_ref.dtype)


def _chip_config():
    """Per-generation tiling / VMEM knobs (conservative for unknown chips)."""
    try:
        kind = jax.devices()[0].device_kind.lower()
    except Exception:
        kind = ""
    if "v7" in kind or "7x" in kind:          # 64 MiB VMEM per TensorCore, 2 TCs/chip
        return dict(vmem_limit=56 * _MIB, budget=48 * _MIB, target_rows=512, cores=2)
    if "v6" in kind:                          # 128 MiB VMEM, 1 TC
        return dict(vmem_limit=100 * _MIB, budget=92 * _MIB, target_rows=512, cores=1)
    if "v5 lite" in kind or "v5e" in kind or "v5litepod" in kind:   # v5e
        return dict(vmem_limit=100 * _MIB, budget=92 * _MIB, target_rows=256, cores=1)
    if "v5" in kind:                          # v5p (megacore)
        return dict(vmem_limit=100 * _MIB, budget=92 * _MIB, target_rows=512, cores=2)
    if "v4" in kind:                          # megacore
        return dict(vmem_limit=100 * _MIB, budget=92 * _MIB, target_rows=256, cores=2)
    # Unknown / older generation: stay inside the default scoped-VMEM limit.
    return dict(vmem_limit=None, budget=14 * _MIB, target_rows=256, cores=1)


def _pick_batch_block(B, N, C, num_heads, *, target_rows, vmem_budget_bytes,
                      compute_itemsize, out_itemsize, num_cores=1):
    """Pick Bt so Bt*N fills the MXU M-dim while the per-step working set stays inside
    the generation-aware VMEM budget, preferring step counts that keep every
    TensorCore busy (the 'parallel' grid axis is sharded across cores)."""
    H, cs, osz = num_heads, compute_itemsize, out_itemsize

    def step_bytes(bt):
        rows = bt * N
        sc = bt * H * N * N
        return (2 * rows * C * cs                      # x block (double-buffered)
                + 2 * rows * C * osz                   # out block (double-buffered)
                + rows * 3 * C * 4                     # qkv f32 matmul result
                + rows * 3 * C * cs                    # qkv compute-dtype copy
                + 3 * rows * C * cs                    # stacked q/k/v copies
                + 2 * sc * 4                           # scores + exp(scores), f32
                + sc * cs                              # probs cast for the PV matmul
                + 2 * rows * C * 4                     # ctx f32 + f32 projection result
                + 2 * rows * C * cs                    # ctx (cdt) + concatenated ctx2d
                + 2 * (3 * C * C + C * C) * cs         # resident weights (double-buffered)
                + 2 * C * 4)                           # resident bias

    divisors = [d for d in range(1, B + 1) if B % d == 0]
    fitting = [d for d in divisors if step_bytes(d) <= vmem_budget_bytes]
    if not fitting:
        # Even Bt=1 blows the budget: N too large for this single-block design.
        # TODO(synk): switch to the KV-tiled online-softmax path before this point.
        return 1

    def keeps_cores_busy(d):
        steps = B // d
        return steps >= num_cores and steps % num_cores == 0

    preferred = [d for d in fitting if keeps_cores_busy(d)] or fitting
    for d in preferred:                        # smallest block that reaches target rows
        if d * N >= target_rows:
            return d
    return preferred[-1]                       # otherwise the largest fitting block


def attention_forward(x, wqkv, wproj, bproj, *, num_heads, scale,
                      batch_block=None, compute_dtype=jnp.bfloat16):
    B, N, C = x.shape
    out_dtype = x.dtype
    cfg = _chip_config()
    cs = jnp.dtype(compute_dtype).itemsize
    osz = jnp.dtype(out_dtype).itemsize
    Bt = batch_block or _pick_batch_block(
        B, N, C, num_heads, target_rows=cfg["target_rows"],
        vmem_budget_bytes=cfg["budget"], compute_itemsize=cs, out_itemsize=osz,
        num_cores=cfg["cores"])
    assert B % Bt == 0, f"batch {B} must be divisible by batch_block {Bt}"

    # Fold the softmax scale into the Q columns of the QKV weight (free, wrapper-side).
    wqkv_scaled = wqkv.astype(jnp.float32).at[:, :C].multiply(scale)

    x_c = x.astype(compute_dtype)
    wqkv_c = wqkv_scaled.astype(compute_dtype)
    wproj_c = wproj.astype(compute_dtype)
    bproj_f = bproj.astype(jnp.float32).reshape(1, C)

    flops = (2 * B * N * C * 3 * C            # QKV projection
             + 4 * B * N * N * C              # Q@K^T and P@V
             + 2 * B * N * C * C)             # output projection
    transcendentals = B * num_heads * N * (N + 1)       # exp + reciprocal
    bytes_accessed = (x_c.size * cs + wqkv_c.size * cs + wproj_c.size * cs
                      + bproj_f.size * 4 + B * N * C * osz)

    compiler_kwargs = dict(dimension_semantics=("parallel",))
    if cfg["vmem_limit"] is not None:
        compiler_kwargs["vmem_limit_bytes"] = int(cfg["vmem_limit"])

    kernel = functools.partial(
        attn_kernel, num_heads=num_heads, compute_dtype=compute_dtype,
        approx_recip=jnp.dtype(compute_dtype) != jnp.dtype(jnp.float32))

    return pl.pallas_call(
        kernel,
        out_shape=jax.ShapeDtypeStruct((B, N, C), out_dtype),
        grid=(B // Bt,),
        in_specs=[
            pl.BlockSpec((Bt, N, C), lambda b: (b, 0, 0)),   # x block
            pl.BlockSpec((C, 3 * C), lambda b: (0, 0)),      # QKV weight (resident)
            pl.BlockSpec((C, C), lambda b: (0, 0)),          # proj weight (resident)
            pl.BlockSpec((1, C), lambda b: (0, 0)),          # proj bias (resident)
        ],
        out_specs=pl.BlockSpec((Bt, N, C), lambda b: (b, 0, 0)),
        compiler_params=pltpu.CompilerParams(**compiler_kwargs),
        cost_estimate=pl.CostEstimate(flops=flops, transcendentals=transcendentals,
                                      bytes_accessed=bytes_accessed),
    )(x_c, wqkv_c, wproj_c, bproj_f)


def attention_reference(x, wqkv, wproj, bproj, *, num_heads, scale):
    """Pure-JAX mirror of the PyTorch forward (correctness check)."""
    B, N, C = x.shape
    hd = C // num_heads
    qkv = x @ wqkv                                            # (B, N, 3C)
    qkv = qkv.reshape(B, N, 3, num_heads, hd).transpose(2, 0, 3, 1, 4)
    q, k, v = qkv[0], qkv[1], qkv[2]                          # (B, H, N, hd)
    attn = jnp.einsum('bhnd,bhmd->bhnm', q, k) * scale
    attn = jax.nn.softmax(attn, axis=-1)
    out = jnp.einsum('bhnm,bhmd->bhnd', attn, v)
    out = out.transpose(0, 2, 1, 3).reshape(B, N, C)
    return out @ wproj + bproj.reshape(1, 1, C)


if __name__ == "__main__":
    B, N, C = 2, 8, 32
    num_heads = 8
    head_dim = C // num_heads
    scale = head_dim ** (-0.5)          # qk_scale=None -> head_dim**-0.5

    key = jax.random.PRNGKey(0)
    kx, kqkv, kproj, kbias = jax.random.split(key, 4)

    x = jax.random.normal(kx, (B, N, C), dtype=jnp.float32)
    # Synthetic parameters (module shapes: qkv Linear(dim, 3*dim, bias=False),
    # proj Linear(dim, dim) with bias).
    wqkv = jax.random.normal(kqkv, (C, 3 * C), dtype=jnp.float32) * 0.05
    wproj = jax.random.normal(kproj, (C, C), dtype=jnp.float32) * 0.05
    bproj = jax.random.normal(kbias, (1, C), dtype=jnp.float32) * 0.05

    ref = attention_reference(x, wqkv, wproj, bproj, num_heads=num_heads, scale=scale)

    # f32 MXU inputs (v5e-friendly path, tight check; exact softmax denominator).
    out_f32 = jax.block_until_ready(
        attention_forward(x, wqkv, wproj, bproj, num_heads=num_heads, scale=scale,
                          compute_dtype=jnp.float32))
    assert out_f32.shape == (B, N, C)
    assert jnp.allclose(out_f32, ref, atol=2e-3, rtol=2e-3), "f32 kernel mismatch vs reference"

    # bf16 MXU inputs with f32 accumulation (v6e/v7x fast path, looser check).
    out_bf16 = jax.block_until_ready(
        attention_forward(x, wqkv, wproj, bproj, num_heads=num_heads, scale=scale,
                          compute_dtype=jnp.bfloat16))
    assert jnp.allclose(out_bf16, ref, atol=2e-2, rtol=2e-2), "bf16 kernel mismatch vs reference"

    print("KERNEL_OK")
</pallas_src>

<mosaic_0001>
module attributes {stable_mosaic.version = 11 : i64} {
  func.func @attn_kernel(%arg0: i32, %arg1: memref<2x8x32xf32, #tpu.memory_space<vmem>>, %arg2: memref<32x96xf32, #tpu.memory_space<vmem>>, %arg3: memref<32x32xf32, #tpu.memory_space<vmem>>, %arg4: memref<1x32xf32, #tpu.memory_space<vmem>>, %arg5: memref<2x8x32xf32, #tpu.memory_space<vmem>>) attributes {dimension_semantics = [#tpu.dimension_semantics<parallel>], iteration_bounds = array<i64: 1>, scalar_prefetch = 0 : i64, scratch_operands = 0 : i64, tpu.core_type = #tpu.core_type<tc>, window_params = [{transform_indices = @transform_0, window_bounds = array<i64: 2, 8, 32>}, {pipeline_mode = #tpu.pipeline_mode<synchronous>, transform_indices = @transform_1, window_bounds = array<i64: 32, 96>}, {pipeline_mode = #tpu.pipeline_mode<synchronous>, transform_indices = @transform_2, window_bounds = array<i64: 32, 32>}, {pipeline_mode = #tpu.pipeline_mode<synchronous>, transform_indices = @transform_3, window_bounds = array<i64: 1, 32>}, {transform_indices = @transform_4, window_bounds = array<i64: 2, 8, 32>}]} {
    %c0 = arith.constant 0 : index
    %c0_0 = arith.constant 0 : index
    %c0_1 = arith.constant 0 : index
    %0 = vector.load %arg1[%c0, %c0_0, %c0_1] : memref<2x8x32xf32, #tpu.memory_space<vmem>>, vector<2x8x32xf32>
    %1 = vector.shape_cast %0 : vector<2x8x32xf32> to vector<16x32xf32>
    %c0_2 = arith.constant 0 : index
    %c0_3 = arith.constant 0 : index
    %2 = vector.load %arg2[%c0_2, %c0_3] : memref<32x96xf32, #tpu.memory_space<vmem>>, vector<32x96xf32>
    %cst = arith.constant dense<0.000000e+00> : vector<16x96xf32>
    %3 = tpu.matmul %1, %2, %cst {dimension_numbers = #tpu.dot_dimension_numbers<[1], [0], [0], [1], [0, 0, 1, 1], [], []>} : vector<16x32xf32>, vector<32x96xf32>, vector<16x96xf32> -> vector<16x96xf32>
    %4 = vector.extract_strided_slice %3 {offsets = [0, 0], sizes = [16, 4], strides = [1, 1]} : vector<16x96xf32> to vector<16x4xf32>
    %5 = vector.extract_strided_slice %3 {offsets = [0, 4], sizes = [16, 4], strides = [1, 1]} : vector<16x96xf32> to vector<16x4xf32>
    %6 = vector.extract_strided_slice %3 {offsets = [0, 8], sizes = [16, 4], strides = [1, 1]} : vector<16x96xf32> to vector<16x4xf32>
    %7 = vector.extract_strided_slice %3 {offsets = [0, 12], sizes = [16, 4], strides = [1, 1]} : vector<16x96xf32> to vector<16x4xf32>
    %8 = vector.extract_strided_slice %3 {offsets = [0, 16], sizes = [16, 4], strides = [1, 1]} : vector<16x96xf32> to vector<16x4xf32>
    %9 = vector.extract_strided_slice %3 {offsets = [0, 20], sizes = [16, 4], strides = [1, 1]} : vector<16x96xf32> to vector<16x4xf32>
    %10 = vector.extract_strided_slice %3 {offsets = [0, 24], sizes = [16, 4], strides = [1, 1]} : vector<16x96xf32> to vector<16x4xf32>
    %11 = vector.extract_strided_slice %3 {offsets = [0, 28], sizes = [16, 4], strides = [1, 1]} : vector<16x96xf32> to vector<16x4xf32>
    %12 = vector.shape_cast %4 : vector<16x4xf32> to vector<1x16x4xf32>
    %13 = vector.shape_cast %5 : vector<16x4xf32> to vector<1x16x4xf32>
    %14 = vector.shape_cast %6 : vector<16x4xf32> to vector<1x16x4xf32>
    %15 = vector.shape_cast %7 : vector<16x4xf32> to vector<1x16x4xf32>
    %16 = vector.shape_cast %8 : vector<16x4xf32> to vector<1x16x4xf32>
    %17 = vector.shape_cast %9 : vector<16x4xf32> to vector<1x16x4xf32>
    %18 = vector.shape_cast %10 : vector<16x4xf32> to vector<1x16x4xf32>
    %19 = vector.shape_cast %11 : vector<16x4xf32> to vector<1x16x4xf32>
    %20 = tpu.concatenate %12, %13, %14, %15, %16, %17, %18, %19 in 0 : vector<1x16x4xf32>, vector<1x16x4xf32>, vector<1x16x4xf32>, vector<1x16x4xf32>, vector<1x16x4xf32>, vector<1x16x4xf32>, vector<1x16x4xf32>, vector<1x16x4xf32> -> vector<8x16x4xf32>
    %21 = vector.shape_cast %20 : vector<8x16x4xf32> to vector<16x8x4xf32>
    %22 = vector.extract_strided_slice %3 {offsets = [0, 32], sizes = [16, 4], strides = [1, 1]} : vector<16x96xf32> to vector<16x4xf32>
    %23 = vector.extract_strided_slice %3 {offsets = [0, 36], sizes = [16, 4], strides = [1, 1]} : vector<16x96xf32> to vector<16x4xf32>
    %24 = vector.extract_strided_slice %3 {offsets = [0, 40], sizes = [16, 4], strides = [1, 1]} : vector<16x96xf32> to vector<16x4xf32>
    %25 = vector.extract_strided_slice %3 {offsets = [0, 44], sizes = [16, 4], strides = [1, 1]} : vector<16x96xf32> to vector<16x4xf32>
    %26 = vector.extract_strided_slice %3 {offsets = [0, 48], sizes = [16, 4], strides = [1, 1]} : vector<16x96xf32> to vector<16x4xf32>
    %27 = vector.extract_strided_slice %3 {offsets = [0, 52], sizes = [16, 4], strides = [1, 1]} : vector<16x96xf32> to vector<16x4xf32>
    %28 = vector.extract_strided_slice %3 {offsets = [0, 56], sizes = [16, 4], strides = [1, 1]} : vector<16x96xf32> to vector<16x4xf32>
    %29 = vector.extract_strided_slice %3 {offsets = [0, 60], sizes = [16, 4], strides = [1, 1]} : vector<16x96xf32> to vector<16x4xf32>
    %30 = vector.shape_cast %22 : vector<16x4xf32> to vector<1x16x4xf32>
    %31 = vector.shape_cast %23 : vector<16x4xf32> to vector<1x16x4xf32>
    %32 = vector.shape_cast %24 : vector<16x4xf32> to vector<1x16x4xf32>
    %33 = vector.shape_cast %25 : vector<16x4xf32> to vector<1x16x4xf32>
    %34 = vector.shape_cast %26 : vector<16x4xf32> to vector<1x16x4xf32>
    %35 = vector.shape_cast %27 : vector<16x4xf32> to vector<1x16x4xf32>
    %36 = vector.shape_cast %28 : vector<16x4xf32> to vector<1x16x4xf32>
    %37 = vector.shape_cast %29 : vector<16x4xf32> to vector<1x16x4xf32>
    %38 = tpu.concatenate %30, %31, %32, %33, %34, %35, %36, %37 in 0 : vector<1x16x4xf32>, vector<1x16x4xf32>, vector<1x16x4xf32>, vector<1x16x4xf32>, vector<1x16x4xf32>, vector<1x16x4xf32>, vector<1x16x4xf32>, vector<1x16x4xf32> -> vector<8x16x4xf32>
    %39 = vector.shape_cast %38 : vector<8x16x4xf32> to vector<16x8x4xf32>
    %40 = vector.extract_strided_slice %3 {offsets = [0, 64], sizes = [16, 4], strides = [1, 1]} : vector<16x96xf32> to vector<16x4xf32>
    %41 = vector.extract_strided_slice %3 {offsets = [0, 68], sizes = [16, 4], strides = [1, 1]} : vector<16x96xf32> to vector<16x4xf32>
    %42 = vector.extract_strided_slice %3 {offsets = [0, 72], sizes = [16, 4], strides = [1, 1]} : vector<16x96xf32> to vector<16x4xf32>
    %43 = vector.extract_strided_slice %3 {offsets = [0, 76], sizes = [16, 4], strides = [1, 1]} : vector<16x96xf32> to vector<16x4xf32>
    %44 = vector.extract_strided_slice %3 {offsets = [0, 80], sizes = [16, 4], strides = [1, 1]} : vector<16x96xf32> to vector<16x4xf32>
    %45 = vector.extract_strided_slice %3 {offsets = [0, 84], sizes = [16, 4], strides = [1, 1]} : vector<16x96xf32> to vector<16x4xf32>
    %46 = vector.extract_strided_slice %3 {offsets = [0, 88], sizes = [16, 4], strides = [1, 1]} : vector<16x96xf32> to vector<16x4xf32>
    %47 = vector.extract_strided_slice %3 {offsets = [0, 92], sizes = [16, 4], strides = [1, 1]} : vector<16x96xf32> to vector<16x4xf32>
    %48 = vector.shape_cast %40 : vector<16x4xf32> to vector<1x16x4xf32>
    %49 = vector.shape_cast %41 : vector<16x4xf32> to vector<1x16x4xf32>
    %50 = vector.shape_cast %42 : vector<16x4xf32> to vector<1x16x4xf32>
    %51 = vector.shape_cast %43 : vector<16x4xf32> to vector<1x16x4xf32>
    %52 = vector.shape_cast %44 : vector<16x4xf32> to vector<1x16x4xf32>
    %53 = vector.shape_cast %45 : vector<16x4xf32> to vector<1x16x4xf32>
    %54 = vector.shape_cast %46 : vector<16x4xf32> to vector<1x16x4xf32>
    %55 = vector.shape_cast %47 : vector<16x4xf32> to vector<1x16x4xf32>
    %56 = tpu.concatenate %48, %49, %50, %51, %52, %53, %54, %55 in 0 : vector<1x16x4xf32>, vector<1x16x4xf32>, vector<1x16x4xf32>, vector<1x16x4xf32>, vector<1x16x4xf32>, vector<1x16x4xf32>, vector<1x16x4xf32>, vector<1x16x4xf32> -> vector<8x16x4xf32>
    %57 = vector.shape_cast %56 : vector<8x16x4xf32> to vector<16x8x4xf32>
    "tpu.trace_start"() <{level = 10 : i32, message = "bqd,bkd->bqk"}> : () -> ()
    %cst_4 = arith.constant dense<0.000000e+00> : vector<16x8x8xf32>
    %58 = tpu.matmul %21, %39, %cst_4 {dimension_numbers = #tpu.dot_dimension_numbers<[2], [2], [1], [1], [0, 0, 0, 1, 1, 1], [0], [0]>} : vector<16x8x4xf32>, vector<16x8x4xf32>, vector<16x8x8xf32> -> vector<16x8x8xf32>
    "tpu.trace_stop"() : () -> ()
    %cst_5 = arith.constant dense<0xFF800000> : vector<16x8xf32>
    %59 = vector.multi_reduction <maximumf>, %58, %cst_5 [2] : vector<16x8x8xf32> to vector<16x8xf32>
    %60 = vector.shape_cast %59 : vector<16x8xf32> to vector<16x8x1xf32>
    %61 = vector.broadcast %60 : vector<16x8x1xf32> to vector<16x8x8xf32>
    %62 = arith.subf %58, %61 : vector<16x8x8xf32>
    %63 = math.exp %62 : vector<16x8x8xf32>
    %cst_6 = arith.constant dense<0.000000e+00> : vector<16x8xf32>
    %64 = vector.multi_reduction <add>, %63, %cst_6 [2] : vector<16x8x8xf32> to vector<16x8xf32>
    %65 = vector.shape_cast %64 : vector<16x8xf32> to vector<16x8x1xf32>
    "tpu.trace_start"() <{level = 10 : i32, message = "bqk,bkd->bqd"}> : () -> ()
    %cst_7 = arith.constant dense<0.000000e+00> : vector<16x8x4xf32>
    %66 = tpu.matmul %63, %57, %cst_7 {dimension_numbers = #tpu.dot_dimension_numbers<[2], [1], [1], [2], [0, 0, 0, 1, 1, 2], [0], [0]>} : vector<16x8x8xf32>, vector<16x8x4xf32>, vector<16x8x4xf32> -> vector<16x8x4xf32>
    "tpu.trace_stop"() : () -> ()
    %cst_8 = arith.constant 1.000000e+00 : f32
    %67 = vector.broadcast %cst_8 : f32 to vector<16x8x1xf32>
    %68 = arith.divf %67, %65 : vector<16x8x1xf32>
    %69 = vector.broadcast %68 : vector<16x8x1xf32> to vector<16x8x4xf32>
    %70 = arith.mulf %66, %69 : vector<16x8x4xf32>
    %71 = vector.shape_cast %70 : vector<16x8x4xf32> to vector<8x16x4xf32>
    %72 = vector.extract_strided_slice %71 {offsets = [0, 0, 0], sizes = [1, 16, 4], strides = [1, 1, 1]} : vector<8x16x4xf32> to vector<1x16x4xf32>
    %73 = vector.shape_cast %72 : vector<1x16x4xf32> to vector<16x4xf32>
    %74 = vector.extract_strided_slice %71 {offsets = [1, 0, 0], sizes = [1, 16, 4], strides = [1, 1, 1]} : vector<8x16x4xf32> to vector<1x16x4xf32>
    %75 = vector.shape_cast %74 : vector<1x16x4xf32> to vector<16x4xf32>
    %76 = vector.extract_strided_slice %71 {offsets = [2, 0, 0], sizes = [1, 16, 4], strides = [1, 1, 1]} : vector<8x16x4xf32> to vector<1x16x4xf32>
    %77 = vector.shape_cast %76 : vector<1x16x4xf32> to vector<16x4xf32>
    %78 = vector.extract_strided_slice %71 {offsets = [3, 0, 0], sizes = [1, 16, 4], strides = [1, 1, 1]} : vector<8x16x4xf32> to vector<1x16x4xf32>
    %79 = vector.shape_cast %78 : vector<1x16x4xf32> to vector<16x4xf32>
    %80 = vector.extract_strided_slice %71 {offsets = [4, 0, 0], sizes = [1, 16, 4], strides = [1, 1, 1]} : vector<8x16x4xf32> to vector<1x16x4xf32>
    %81 = vector.shape_cast %80 : vector<1x16x4xf32> to vector<16x4xf32>
    %82 = vector.extract_strided_slice %71 {offsets = [5, 0, 0], sizes = [1, 16, 4], strides = [1, 1, 1]} : vector<8x16x4xf32> to vector<1x16x4xf32>
    %83 = vector.shape_cast %82 : vector<1x16x4xf32> to vector<16x4xf32>
    %84 = vector.extract_strided_slice %71 {offsets = [6, 0, 0], sizes = [1, 16, 4], strides = [1, 1, 1]} : vector<8x16x4xf32> to vector<1x16x4xf32>
    %85 = vector.shape_cast %84 : vector<1x16x4xf32> to vector<16x4xf32>
    %86 = vector.extract_strided_slice %71 {offsets = [7, 0, 0], sizes = [1, 16, 4], strides = [1, 1, 1]} : vector<8x16x4xf32> to vector<1x16x4xf32>
    %87 = vector.shape_cast %86 : vector<1x16x4xf32> to vector<16x4xf32>
    %88 = tpu.concatenate %73, %75, %77, %79, %81, %83, %85, %87 in 1 : vector<16x4xf32>, vector<16x4xf32>, vector<16x4xf32>, vector<16x4xf32>, vector<16x4xf32>, vector<16x4xf32>, vector<16x4xf32>, vector<16x4xf32> -> vector<16x32xf32>
    %c0_9 = arith.constant 0 : index
    %c0_10 = arith.constant 0 : index
    %89 = vector.load %arg3[%c0_9, %c0_10] : memref<32x32xf32, #tpu.memory_space<vmem>>, vector<32x32xf32>
    %cst_11 = arith.constant dense<0.000000e+00> : vector<16x32xf32>
    %90 = tpu.matmul %88, %89, %cst_11 {dimension_numbers = #tpu.dot_dimension_numbers<[1], [0], [0], [1], [0, 0, 1, 1], [], []>} : vector<16x32xf32>, vector<32x32xf32>, vector<16x32xf32> -> vector<16x32xf32>
    %c0_12 = arith.constant 0 : index
    %c0_13 = arith.constant 0 : index
    %91 = vector.load %arg4[%c0_12, %c0_13] : memref<1x32xf32, #tpu.memory_space<vmem>>, vector<1x32xf32>
    %92 = vector.broadcast %91 : vector<1x32xf32> to vector<16x32xf32>
    %93 = arith.addf %90, %92 : vector<16x32xf32>
    %94 = vector.shape_cast %93 : vector<16x32xf32> to vector<2x8x32xf32>
    %c0_14 = arith.constant 0 : index
    %c0_15 = arith.constant 0 : index
    %c0_16 = arith.constant 0 : index
    %95 = vector.load %arg5[%c0_14, %c0_15, %c0_16] : memref<2x8x32xf32, #tpu.memory_space<vmem>>, vector<2x8x32xf32>
    tpu.vector_store %arg5[%c0_14, %c0_15, %c0_16], %94 {strides = array<i32>} : memref<2x8x32xf32, #tpu.memory_space<vmem>>, vector<2x8x32xf32>,
    return
  }
  func.func @transform_0(%arg0: i32) -> (i32, i32, i32) {
    %c0_i32 = arith.constant 0 : i32
    %c0_i32_0 = arith.constant 0 : i32
    %c0_i32_1 = arith.constant 0 : i32
    return %arg0, %c0_i32, %c0_i32_0 : i32, i32, i32
  }
  func.func @transform_1(%arg0: i32) -> (i32, i32) {
    %c0_i32 = arith.constant 0 : i32
    %c0_i32_0 = arith.constant 0 : i32
    %c0_i32_1 = arith.constant 0 : i32
    return %c0_i32, %c0_i32_0 : i32, i32
  }
  func.func @transform_2(%arg0: i32) -> (i32, i32) {
    %c0_i32 = arith.constant 0 : i32
    %c0_i32_0 = arith.constant 0 : i32
    %c0_i32_1 = arith.constant 0 : i32
    return %c0_i32, %c0_i32_0 : i32, i32
  }
  func.func @transform_3(%arg0: i32) -> (i32, i32) {
    %c0_i32 = arith.constant 0 : i32
    %c0_i32_0 = arith.constant 0 : i32
    %c0_i32_1 = arith.constant 0 : i32
    return %c0_i32, %c0_i32_0 : i32, i32
  }
  func.func @transform_4(%arg0: i32) -> (i32, i32, i32) {
    %c0_i32 = arith.constant 0 : i32
    %c0_i32_0 = arith.constant 0 : i32
    %c0_i32_1 = arith.constant 0 : i32
    return %arg0, %c0_i32, %c0_i32_0 : i32, i32, i32
  }
}

</mosaic_0001>

<bundles_post_ra>
// kernel: tpu_custom_call.1
= control target key start
LH: loop header
LB: loop body
LE: loop exit
PB: predicated region body
PF: predicated region fallthrough
CT: control target
= control target key end

     0   :  { %9 = vsyncpa [#allocation3], 0  ;;  %s4034_s0 = inlined_call_operand.hbm [shape: f32[2,8,32], index: 0, kind: input, shape index: {}]   ;;  %s4035_s1 = inlined_call_operand.hbm [shape: f32[32,96], index: 1, kind: input, shape index: {}]   ;;  %s4036_s2 = inlined_call_operand.hbm [shape: f32[32,32], index: 2, kind: input, shape index: {}]   ;;  %s4037_s3 = inlined_call_operand.vmem [shape: f32[1,32], index: 3, kind: input, shape index: {}]   ;;  %s4038_s4 = inlined_call_operand.hbm [shape: f32[2,8,32], index: 4, kind: output, shape index: {}]  }
   0x1   :  { %10 = vsyncpa [#allocation6], 0 }
   0x2   :  { %11 = vsyncpa [#allocation4], 0  ;;  %s3498_s15 = smov [#allocation5]   ;;  %s3499_s17 = smov [#allocation2]  }
   0x3   :  { %s29_s16 = sshll.u32 %s3498_s15, 4  ;;  %s17_s18 = sshll.u32 %s3499_s17, 4  ;;  %s30_s16 = int_to_ptr.vmem [resolvable:$true] %s29_s16  ;;  %s3546_s18 = int_to_ptr.vmem [resolvable:$true] %s17_s18 }
   0x4   :  { %s3404_s21 = scalar_lea.hbm %s4035_s1, 512 }
   0x5   :  { %p3405_p0 = scmp.ne.s32.totalorder %s4035_s1, %s3404_s21  ;;  %p3408_p1 = scmp.lt.u32.totalorder %s3404_s21, %s4035_s1 }
   0x7   :  { %p3410_p2 = pnand %p3408_p1, %p3405_p0 }
   0x9   :  { %3413 = shalt.err (!%p3410_p2)
}
   0xa   :  { %s3414_s26 = scalar_lea.vmem %s30_s16, 512  ;;  %p3419_p4 = scmp.lt.s32.totalorder %s30_s16, %s30_s16 }
   0xb   :  { %p3415_p3 = scmp.ne.s32.totalorder %s30_s16, %s3414_s26  ;;  %p3420_p5 = scmp.lt.s32.totalorder %s3414_s26, %s3414_s26 }
   0xd   :  { %p3421_p6 = por %p3420_p5, %p3419_p4 }
   0xf   :  { %p3422_p7 = pnand %p3421_p6, %p3415_p3 }
  0x11   :  { %3425 = shalt.err (!%p3422_p7)
}
  0x12   :  { %s3500_s27 = smov 128   ;;  %s3501_s28 = smov 8  }
  0x13   :  { %35 = dma.hbm_to_vmem [thread:$0]  %s4035_s1, 512, %s30_s16, [#allocation6], %s3500_s27, %s3500_s27, %s3501_s28  }
  0x14   :  { %s3426_s7 = scalar_lea.hbm %s4034_s0, 256 }
  0x15   :  { %p3427_p8 = scmp.ne.s32.totalorder %s4034_s0, %s3426_s7  ;;  %p3430_p9 = scmp.lt.u32.totalorder %s3426_s7, %s4034_s0 }
  0x17   :  { %p3432_p10 = pnand %p3430_p9, %p3427_p8 }
  0x19   :  { %3435 = shalt.err (!%p3432_p10)
}
  0x1a   :  { %s3436_s12 = scalar_lea.vmem %s3546_s18, 256  ;;  %p3441_p12 = scmp.lt.s32.totalorder %s3546_s18, %s3546_s18 }
  0x1b   :  { %p3437_p11 = scmp.ne.s32.totalorder %s3546_s18, %s3436_s12  ;;  %p3442_p13 = scmp.lt.s32.totalorder %s3436_s12, %s3436_s12 }
  0x1d   :  { %p3443_p0 = por %p3442_p13, %p3441_p12 }
  0x1f   :  { %p3444_p1 = pnand %p3443_p0, %p3437_p11 }
  0x21   :  { %3447 = shalt.err (!%p3444_p1)
}
  0x22   :  { %23 = dma.hbm_to_vmem [thread:$0]  %s4034_s0, 256, %s3546_s18, [#allocation3], %s3500_s27, %s3500_s27, %s3501_s28  }
  0x23   :  { %s3502_s14 = smov [#allocation7]   ;;  %s3448_s19 = scalar_lea.hbm %s4036_s2, 512 }
  0x24   :  { %s41_s15 = sshll.u32 %s3502_s14, 4  ;;  %p3449_p2 = scmp.ne.s32.totalorder %s4036_s2, %s3448_s19  ;;  %s42_s15 = int_to_ptr.vmem [resolvable:$true] %s41_s15 }
  0x25   :  { %p3452_p3 = scmp.lt.u32.totalorder %s3448_s19, %s4036_s2 }
  0x27   :  { %p3454_p4 = pnand %p3452_p3, %p3449_p2 }
  0x29   :  { %3457 = shalt.err (!%p3454_p4)
}
  0x2a   :  { %s3458_s24 = scalar_lea.vmem %s42_s15, 512  ;;  %p3463_p6 = scmp.lt.s32.totalorder %s42_s15, %s42_s15 }
  0x2b   :  { %p3459_p5 = scmp.ne.s32.totalorder %s42_s15, %s3458_s24  ;;  %p3464_p7 = scmp.lt.s32.totalorder %s3458_s24, %s3458_s24 }
  0x2d   :  { %p3465_p8 = por %p3464_p7, %p3463_p6 }
  0x2f   :  { %p3466_p9 = pnand %p3465_p8, %p3459_p5 }
  0x31   :  { %3469 = shalt.err (!%p3466_p9)
}
  0x32   :  { %47 = dma.hbm_to_vmem [thread:$0]  %s4036_s2, 512, %s42_s15, [#allocation6], %s3500_s27, %s3500_s27, %s3501_s28  }
  0x33   :  { %3492 = dma.done.wait [#allocation3], 256  }
  0x34   :  { %3493 = vsyncadd [#allocation3], 4294967040 }
  0x35   :  { %3494 = dma.done.wait [#allocation6], 1024  }
  0x36   :  { %3495 = vsyncadd [#allocation6], 4294966272  ;;  %vm65_vm0 = vcmask 261120   ;;  %v61_v0 = vld [vmem:[#allocation5] sm:$0xff]  ;;  %v62_v1 = vld [vmem:[#allocation5 + $0x8] sm:$0xff]  ;;  %s3503_s2 = smov 120  }
  0x37   :  { %v63_v2 = vld [vmem:[#allocation5 + $0x10] sm:$0xff]  ;;  %v3301_v3 = vpack.c.bf16 %v62_v1, %v61_v0  ;;  %v64_v4 = vld [vmem:[#allocation5 + $0x18] sm:$0xff]  ;;  %s3504_s25 = smov 124   ;;  %s3505_s26 = smov 116   ;;  %v3507_v10 = vmov 0.0   ;;  %vm3509_vm1 = vmmov 0  }
  0x38   :  { %v59_v5 = vld [vmem:[#allocation2] sm:$0xff]  ;;  %v3305_v6 = vpack.c.bf16 %v64_v4, %v63_v2  ;;  %v60_v7 = vld [vmem:[#allocation2 + $0x8] sm:$0xff]  ;;  %s3506_s29 = smov 112   ;;  %3130 = vmatprep.subr.mxu1 %v3507_v10  ;;  %s3508_s30 = smov 108   ;;  %3132 = vmatprep.mubr.msk.f32.mxu1 %vm3509_vm1, %v3507_v10  ;;  %vm179_vm2 = vcmask 31744   ;;  %vm1394_vm3 = vcmask 64512  }
  0x39   :  { %3127 = vmatprep.mubr.msk.f32.mxu0 %vm65_vm0, %v59_v5  ;;  %3302 = vmatprep.subr.bf16.mxu0 %v3301_v3  ;;  %s3510_s5 = smov 104   ;;  %s3511_s6 = smov 100   ;;  %vm2863_vm4 = vcmask 97280   ;;  %vm2866_vm5 = vcmask 130048   ;;  %vm2869_vm6 = vcmask 162816   ;;  %vm2872_vm7 = vcmask 195584  }
  0x3a   :  { %3304 = vmatpush3.bf16.msra.mxu0 %v3301_v3  ;;  %s3512_s7 = smov 96   ;;  %s3513_s8 = smov 64   ;;  %vm2875_vm8 = vcmask 228352  }
  0x3b   :  { %3306 = vmatprep.subr.bf16.mxu0 %v3305_v6  ;;  %s3514_s9 = smov 4   ;;  %s3515_s10 = smov 12  }
  0x3c   :  { %s3516_s11 = smov 16   ;;  %s3517_s12 = smov 20  }
  0x3d   :  { %s3518_s1 = smov 24   ;;  %s3519_s13 = smov 28  }
  0x3e   :  { %3308 = vmatpush3.bf16.msra.mxu0 %v3305_v6  ;;  %s3520_s16 = smov [#allocation8]  }
  0x3f   :  { %3150 = vmatprep.subr.mxu0 %v3507_v10  ;;  %s2977_s17 = sshll.u32 %s3520_s16, 4  ;;  %s2978_s17 = int_to_ptr.vmem [resolvable:$true] %s2977_s17 }
  0x40   :  { %s3470_s19 = scalar_lea.vmem %s2978_s17, 256  ;;  %p3475_p11 = scmp.lt.s32.totalorder %s2978_s17, %s2978_s17 }
  0x41   :  { %3128 = vmatmul.mubr.msk.f32.vlgmr.msra.gmra.mrb[0].mxu0 %vm65_vm0, %v60_v7  ;;  %p3471_p10 = scmp.ne.s32.totalorder %s2978_s17, %s3470_s19  ;;  %p3476_p12 = scmp.lt.s32.totalorder %s3470_s19, %s3470_s19 }
  0x42   :  { %3152 = vmatprep.mubr.msk.f32.mxu0 %vm3509_vm1, %v3507_v10 }
  0x43   :  { %p3477_p13 = por %p3476_p12, %p3475_p11 }
  0x45   :  { %p3478_p0 = pnand %p3477_p13, %p3471_p10 }
 0x114   :  { %v3600_v8 = vpop.f32.mrb[0].mxu0 }
 0x115   :  { %v3602_v9 = vpop.f32.mrb[1].mxu0 }
 0x116   :  { %153 = vrot.lane.b32.xlu1 %v3602_v9, %s3503_s2  ;;  %149 = vrot.lane.b32.xlu0 %v3602_v9, %s3504_s25 }
 0x11a   :  { %155 = vrot.lane.b32.xlu1 %v3600_v8, %s3503_s2  ;;  %151 = vrot.lane.b32.xlu0 %v3600_v8, %s3504_s25 }
 0x11e   :  { %159 = vrot.lane.b32.xlu1 %v3600_v8, %s3505_s26  ;;  %157 = vrot.lane.b32.xlu0 %v3602_v9, %s3505_s26 }
 0x122   :  { %163 = vrot.lane.b32.xlu1 %v3600_v8, %s3506_s29  ;;  %161 = vrot.lane.b32.xlu0 %v3602_v9, %s3506_s29 }
 0x126   :  { %167 = vrot.lane.b32.xlu1 %v3600_v8, %s3508_s30  ;;  %165 = vrot.lane.b32.xlu0 %v3602_v9, %s3508_s30 }
 0x12a   :  { %171 = vrot.lane.b32.xlu1 %v3600_v8, %s3510_s5  ;;  %169 = vrot.lane.b32.xlu0 %v3602_v9, %s3510_s5 }
 0x12e   :  { %175 = vrot.lane.b32.xlu1 %v3600_v8, %s3511_s6  ;;  %173 = vrot.lane.b32.xlu0 %v3602_v9, %s3511_s6 }
 0x132   :  { %254 = vrot.lane.b32.xlu1 %v3600_v8, %s3512_s7  ;;  %177 = vrot.lane.b32.xlu0 %v3602_v9, %s3512_s7 }
 0x188   :  { %v3628_v11 = vpop.permute.xlu1 %153  ;;  %v150_v12 = vpop.permute.xlu0 %149 }
 0x189   :  { %330 = vrot.lane.b32.xlu0 %v150_v12, %s3512_s7 }
 0x18c   :  { %v3631_v13 = vpop.permute.xlu1 %155  ;;  %v152_v14 = vpop.permute.xlu0 %151 }
 0x18d   :  { %482 = vrot.lane.b32.xlu0 %v3628_v11, %s3512_s7  ;;  %406 = vrot.lane.b32.xlu1 %v152_v14, %s3512_s7 }
 0x190   :  { %v3636_v15 = vpop.permute.xlu1 %159  ;;  %v3638_v16 = vpop.permute.xlu0 %157 }
 0x191   :  { %558 = vrot.lane.b32.xlu1 %v3631_v13, %s3512_s7  ;;  %634 = vrot.lane.b32.xlu0 %v3638_v16, %s3512_s7 }
 0x194   :  { %v3644_v17 = vpop.permute.xlu1 %163  ;;  %v3646_v18 = vpop.permute.xlu0 %161 }
 0x195   :  { %710 = vrot.lane.b32.xlu1 %v3636_v15, %s3512_s7  ;;  %786 = vrot.lane.b32.xlu0 %v3646_v18, %s3512_s7 }
 0x198   :  { %v3652_v19 = vpop.permute.xlu1 %167  ;;  %v3654_v20 = vpop.permute.xlu0 %165 }
 0x199   :  { %862 = vrot.lane.b32.xlu1 %v3644_v17, %s3512_s7  ;;  %938 = vrot.lane.b32.xlu0 %v3654_v20, %s3512_s7 }
 0x19c   :  { %v3660_v21 = vpop.permute.xlu0 %169  ;;  %v3662_v22 = vpop.permute.xlu1 %171 }
 0x19d   :  { %1014 = vrot.lane.b32.xlu1 %v3652_v19, %s3512_s7  ;;  %1090 = vrot.lane.b32.xlu0 %v3660_v21, %s3512_s7 }
 0x1a0   :  { %v3668_v23 = vpop.permute.xlu0 %173  ;;  %v3674_v24 = vpop.permute.xlu1 %175 }
 0x1a1   :  { %1166 = vrot.lane.b32.xlu1 %v3662_v22, %s3512_s7  ;;  %1242 = vrot.lane.b32.xlu0 %v3668_v23, %s3512_s7 }
 0x1a4   :  { %v178_v25 = vpop.permute.xlu0 %177  ;;  %v255_v26 = vpop.permute.xlu1 %254 }
 0x1a5   :  { %1318 = vrot.lane.b32.xlu1 %v3674_v24, %s3512_s7  ;;  %1539 = vrot.lane.b32.xlu0 %v3602_v9, %s3513_s8 }
 0x1a6   :  { %3131 = vmatpush3.xpose.msk.msra.mxu1 %vm179_vm2, %v178_v25 }
 0x1a7   :  { %3135 = vmatprep.subr.mxu1 %v3507_v10 }
 0x1a9   :  { %3133 = vmatmul.mubr.msk.f32.vlgmr.msra.gmra.mrb[0].mxu1 %vm179_vm2, %v3602_v9  ;;  %1615 = vrot.lane.b32.xlu1 %v3600_v8, %s3513_s8 }
 0x1aa   :  { %1691 = vrot.lane.b32.xlu0 %v150_v12, %s3513_s8  ;;  %3136 = vmatpush3.xpose.msk.msra.mxu1 %vm179_vm2, %v255_v26 }
 0x1ab   :  { %3137 = vmatprep.mubr.msk.f32.mxu1 %vm3509_vm1, %v3507_v10  ;;  %3140 = vmatprep.subr.mxu1 %v3507_v10 }
 0x1ad   :  { %3138 = vmatmul.mubr.msk.f32.vlgmr.msra.gmra.mrb[2].mxu1 %vm179_vm2, %v3600_v8  ;;  %1767 = vrot.lane.b32.xlu1 %v152_v14, %s3513_s8 }
 0x1ae   :  { %1843 = vrot.lane.b32.xlu0 %v3628_v11, %s3513_s8  ;;  %3142 = vmatprep.mubr.msk.f32.mxu1 %vm3509_vm1, %v3507_v10 }
 0x1b1   :  { %1919 = vrot.lane.b32.xlu1 %v3631_v13, %s3513_s8 }
 0x1b2   :  { %1995 = vrot.lane.b32.xlu0 %v3638_v16, %s3513_s8 }
 0x1b5   :  { %2071 = vrot.lane.b32.xlu1 %v3636_v15, %s3513_s8 }
 0x1b6   :  { %2147 = vrot.lane.b32.xlu0 %v3646_v18, %s3513_s8 }
 0x1b9   :  { %2223 = vrot.lane.b32.xlu1 %v3644_v17, %s3513_s8 }
 0x1ba   :  { %2299 = vrot.lane.b32.xlu0 %v3654_v20, %s3513_s8 }
 0x1bd   :  { %2375 = vrot.lane.b32.xlu1 %v3652_v19, %s3513_s8 }
 0x1be   :  { %2451 = vrot.lane.b32.xlu0 %v3660_v21, %s3513_s8 }
 0x1c1   :  { %2527 = vrot.lane.b32.xlu1 %v3662_v22, %s3513_s8 }
 0x1fb   :  { %v331_v27 = vpop.permute.xlu0 %330 }
 0x1fc   :  { %3141 = vmatpush3.xpose.msk.msra.mxu1 %vm179_vm2, %v331_v27 }
 0x1fd   :  { %3145 = vmatprep.subr.mxu1 %v3507_v10 }
 0x1ff   :  { %v407_v28 = vpop.permute.xlu1 %406  ;;  %3143 = vmatmul.mubr.msk.f32.vlgmr.msra.gmra.mrb[4].mxu1 %vm179_vm2, %v150_v12  ;;  %v483_v29 = vpop.permute.xlu0 %482 }
 0x200   :  { %3146 = vmatpush3.xpose.msk.msra.mxu1 %vm179_vm2, %v407_v28  ;;  %3151 = vmatpush3.xpose.msk.msra.mxu0 %vm179_vm2, %v483_v29 }
 0x201   :  { %3147 = vmatprep.mubr.msk.f32.mxu1 %vm3509_vm1, %v3507_v10  ;;  %3155 = vmatprep.subr.mxu1 %v3507_v10 }
 0x202   :  { %3160 = vmatprep.subr.mxu0 %v3507_v10 }
 0x203   :  { %v559_v30 = vpop.permute.xlu1 %558  ;;  %3148 = vmatmul.mubr.msk.f32.vlgmr.msra.gmra.mrb[6].mxu1 %vm179_vm2, %v152_v14  ;;  %3153 = vmatmul.mubr.msk.f32.vlgmr.msra.gmra.mrb[2].mxu0 %vm179_vm2, %v3628_v11  ;;  %v635_v31 = vpop.permute.xlu0 %634 }
 0x204   :  { %3156 = vmatpush3.xpose.msk.msra.mxu1 %vm179_vm2, %v559_v30  ;;  %3161 = vmatpush3.xpose.msk.msra.mxu0 %vm179_vm2, %v635_v31 }
 0x205   :  { %3157 = vmatprep.mubr.msk.f32.mxu1 %vm3509_vm1, %v3507_v10  ;;  %3162 = vmatprep.mubr.msk.f32.mxu0 %vm3509_vm1, %v3507_v10 }
 0x206   :  { %3165 = vmatprep.subr.mxu1 %v3507_v10  ;;  %3170 = vmatprep.subr.mxu0 %v3507_v10 }
 0x207   :  { %v711_v32 = vpop.permute.xlu1 %710  ;;  %3158 = vmatmul.mubr.msk.f32.vlgmr.msra.gmra.mrb[8].mxu1 %vm179_vm2, %v3631_v13  ;;  %3163 = vmatmul.mubr.msk.f32.vlgmr.msra.gmra.mrb[4].mxu0 %vm179_vm2, %v3638_v16  ;;  %v787_v33 = vpop.permute.xlu0 %786 }
 0x208   :  { %3166 = vmatpush3.xpose.msk.msra.mxu1 %vm179_vm2, %v711_v32  ;;  %3171 = vmatpush3.xpose.msk.msra.mxu0 %vm179_vm2, %v787_v33 }
 0x209   :  { %3167 = vmatprep.mubr.msk.f32.mxu1 %vm3509_vm1, %v3507_v10  ;;  %3172 = vmatprep.mubr.msk.f32.mxu0 %vm3509_vm1, %v3507_v10 }
 0x20a   :  { %3175 = vmatprep.subr.mxu1 %v3507_v10  ;;  %3180 = vmatprep.subr.mxu0 %v3507_v10 }
 0x20b   :  { %v863_v34 = vpop.permute.xlu1 %862  ;;  %3168 = vmatmul.mubr.msk.f32.vlgmr.msra.gmra.mrb[10].mxu1 %vm179_vm2, %v3636_v15  ;;  %3173 = vmatmul.mubr.msk.f32.vlgmr.msra.gmra.mrb[6].mxu0 %vm179_vm2, %v3646_v18  ;;  %v939_v35 = vpop.permute.xlu0 %938 }
 0x20c   :  { %3176 = vmatpush3.xpose.msk.msra.mxu1 %vm179_vm2, %v863_v34  ;;  %3181 = vmatpush3.xpose.msk.msra.mxu0 %vm179_vm2, %v939_v35 }
 0x20d   :  { %3177 = vmatprep.mubr.msk.f32.mxu1 %vm3509_vm1, %v3507_v10  ;;  %3182 = vmatprep.mubr.msk.f32.mxu0 %vm3509_vm1, %v3507_v10 }
 0x20e   :  { %3185 = vmatprep.subr.mxu1 %v3507_v10  ;;  %3190 = vmatprep.subr.mxu0 %v3507_v10 }
 0x20f   :  { %v1015_v36 = vpop.permute.xlu1 %1014  ;;  %3178 = vmatmul.mubr.msk.f32.vlgmr.msra.gmra.mrb[12].mxu1 %vm179_vm2, %v3644_v17  ;;  %3183 = vmatmul.mubr.msk.f32.vlgmr.msra.gmra.mrb[8].mxu0 %vm179_vm2, %v3654_v20  ;;  %v1091_v37 = vpop.permute.xlu0 %1090 }
 0x210   :  { %3186 = vmatpush3.xpose.msk.msra.mxu1 %vm179_vm2, %v1015_v36  ;;  %3191 = vmatpush3.xpose.msk.msra.mxu0 %vm179_vm2, %v1091_v37 }
 0x211   :  { %3187 = vmatprep.mubr.msk.f32.mxu1 %vm3509_vm1, %v3507_v10  ;;  %3192 = vmatprep.mubr.msk.f32.mxu0 %vm3509_vm1, %v3507_v10 }
 0x212   :  { %3195 = vmatprep.subr.mxu1 %v3507_v10  ;;  %3200 = vmatprep.subr.mxu0 %v3507_v10 }
 0x213   :  { %v1167_v38 = vpop.permute.xlu1 %1166  ;;  %3188 = vmatmul.mubr.msk.f32.vlgmr.msra.gmra.mrb[14].mxu1 %vm179_vm2, %v3652_v19  ;;  %3193 = vmatmul.mubr.msk.f32.vlgmr.msra.gmra.mrb[10].mxu0 %vm179_vm2, %v3660_v21  ;;  %v1243_v39 = vpop.permute.xlu0 %1242 }
 0x214   :  { %3196 = vmatpush3.xpose.msk.msra.mxu1 %vm179_vm2, %v1167_v38  ;;  %3201 = vmatpush3.xpose.msk.msra.mxu0 %vm179_vm2, %v1243_v39 }
 0x215   :  { %3197 = vmatprep.mubr.msk.f32.mxu1 %vm3509_vm1, %v3507_v10  ;;  %3202 = vmatprep.mubr.msk.f32.mxu0 %vm3509_vm1, %v3507_v10 }
 0x216   :  { %3205 = vmatprep.subr.mxu1 %v3507_v10  ;;  %3210 = vmatprep.subr.mxu0 %v3507_v10 }
 0x217   :  { %v1319_v40 = vpop.permute.xlu1 %1318  ;;  %3198 = vmatmul.mubr.msk.f32.vlgmr.msra.gmra.mrb[16].mxu1 %vm179_vm2, %v3662_v22  ;;  %3203 = vmatmul.mubr.msk.f32.vlgmr.msra.gmra.mrb[12].mxu0 %vm179_vm2, %v3668_v23  ;;  %v1540_v41 = vpop.permute.xlu0 %1539 }
 0x218   :  { %3206 = vmatpush3.xpose.msk.msra.mxu1 %vm179_vm2, %v1319_v40  ;;  %3211 = vmatpush3.msra.mxu0 %v1540_v41 }
 0x219   :  { %3207 = vmatprep.mubr.msk.f32.mxu1 %vm3509_vm1, %v3507_v10  ;;  %3215 = vmatprep.subr.mxu1 %v3507_v10 }
 0x21a   :  { %3212 = vmatprep.mubr.msk.f32.mxu0 %vm3509_vm1, %v3507_v10  ;;  %3220 = vmatprep.subr.mxu0 %v3507_v10 }
 0x21b   :  { %v1616_v42 = vpop.permute.xlu1 %1615  ;;  %3208 = vmatmul.mubr.msk.f32.vlgmr.msra.gmra.mrb[18].mxu1 %vm179_vm2, %v3674_v24 }
 0x21c   :  { %3216 = vmatpush3.msra.mxu1 %v1616_v42  ;;  %3217 = vmatprep.mubr.msk.f32.mxu1 %vm3509_vm1, %v3507_v10  ;;  %v1692_v19 = vpop.permute.xlu0 %1691 }
 0x21d   :  { %3225 = vmatprep.subr.mxu1 %v3507_v10 }
 0x21f   :  { %v1768_v28 = vpop.permute.xlu1 %1767 }
 0x220   :  { %v3862_v30 = vpop.permute.xlu0 %1843 }
 0x223   :  { %v3866_v33 = vpop.permute.xlu1 %1919 }
 0x224   :  { %v3868_v34 = vpop.permute.xlu0 %1995 }
 0x227   :  { %v3870_v35 = vpop.permute.xlu1 %2071 }
 0x228   :  { %v3872_v36 = vpop.permute.xlu0 %2147 }
 0x22b   :  { %v3874_v37 = vpop.permute.xlu1 %2223 }
 0x22c   :  { %v3876_v38 = vpop.permute.xlu0 %2299 }
 0x22f   :  { %v3882_v39 = vpop.permute.xlu1 %2375 }
 0x230   :  { %v3884_v40 = vpop.permute.xlu0 %2451 }
 0x233   :  { %v3886_v41 = vpop.permute.xlu1 %2527 }
 0x27c   :  { %v3800_v43 = vpop.f32.mrb[0].mxu1 }
 0x27d   :  { %v3134_v44 = vpop.f32.mrb[1].mxu1  ;;  %v1395_v45 = vsel %vm1394_vm3, %v3800_v43, -inf }
 0x27e   :  { %1396 = vmax.xlane.f32.xlu0 %v1395_v45 }
 0x280   :  { %v3804_v46 = vpop.f32.mrb[2].mxu1 }
 0x281   :  { %v3139_v47 = vpop.f32.mrb[3].mxu1  ;;  %v1398_v48 = vsel %vm1394_vm3, %v3804_v46, -inf }
 0x282   :  { %1399 = vmax.xlane.f32.xlu1 %v1398_v48 }
 0x2d2   :  { %v3808_v49 = vpop.f32.mrb[4].mxu1 }
 0x2d3   :  { %v3144_v50 = vpop.f32.mrb[5].mxu1  ;;  %v1401_v51 = vsel %vm1394_vm3, %v3808_v49, -inf }
 0x2d4   :  { %1402 = vmax.xlane.f32.xlu0 %v1401_v51 }
 0x2d6   :  { %v3812_v52 = vpop.f32.mrb[6].mxu1  ;;  %v3814_v53 = vpop.f32.mrb[2].mxu0 }
 0x2d7   :  { %v3149_v54 = vpop.f32.mrb[7].mxu1  ;;  %v3154_v55 = vpop.f32.mrb[3].mxu0  ;;  %v1404_v56 = vsel %vm1394_vm3, %v3812_v52, -inf  ;;  %v1407_v57 = vsel %vm1394_vm3, %v3814_v53, -inf }
 0x2d8   :  { %1405 = vmax.xlane.f32.xlu0 %v1404_v56  ;;  %1408 = vmax.xlane.f32.xlu1 %v1407_v57 }
 0x2da   :  { %v3820_v58 = vpop.f32.mrb[8].mxu1  ;;  %v3822_v59 = vpop.f32.mrb[4].mxu0 }
 0x2db   :  { %v3159_v60 = vpop.f32.mrb[9].mxu1  ;;  %v3164_v61 = vpop.f32.mrb[5].mxu0  ;;  %v1410_v62 = vsel %vm1394_vm3, %v3820_v58, -inf  ;;  %v1413_v63 = vsel %vm1394_vm3, %v3822_v59, -inf }
 0x2dc   :  { %1411 = vmax.xlane.f32.xlu0 %v1410_v62  ;;  %1414 = vmax.xlane.f32.xlu1 %v1413_v63 }
 0x2de   :  { %v3828_v0 = vpop.f32.mrb[10].mxu1  ;;  %v3830_v1 = vpop.f32.mrb[6].mxu0 }
 0x2df   :  { %v3169_v2 = vpop.f32.mrb[11].mxu1  ;;  %v3174_v3 = vpop.f32.mrb[7].mxu0  ;;  %v1416_v4 = vsel %vm1394_vm3, %v3828_v0, -inf  ;;  %v1419_v5 = vsel %vm1394_vm3, %v3830_v1, -inf }
 0x2e0   :  { %1417 = vmax.xlane.f32.xlu0 %v1416_v4  ;;  %1420 = vmax.xlane.f32.xlu1 %v1419_v5 }
 0x2e2   :  { %v3836_v6 = vpop.f32.mrb[12].mxu1  ;;  %v3838_v7 = vpop.f32.mrb[8].mxu0 }
 0x2e3   :  { %v3179_v8 = vpop.f32.mrb[13].mxu1  ;;  %v3184_v9 = vpop.f32.mrb[9].mxu0  ;;  %v1422_v11 = vsel %vm1394_vm3, %v3836_v6, -inf  ;;  %v1425_v12 = vsel %vm1394_vm3, %v3838_v7, -inf }
 0x2e4   :  { %1423 = vmax.xlane.f32.xlu0 %v1422_v11  ;;  %1426 = vmax.xlane.f32.xlu1 %v1425_v12 }
 0x2e6   :  { %v3844_v13 = vpop.f32.mrb[14].mxu1  ;;  %v3846_v14 = vpop.f32.mrb[10].mxu0 }
 0x2e7   :  { %v3189_v15 = vpop.f32.mrb[15].mxu1  ;;  %v3194_v16 = vpop.f32.mrb[11].mxu0  ;;  %v1428_v17 = vsel %vm1394_vm3, %v3844_v13, -inf  ;;  %v1431_v18 = vsel %vm1394_vm3, %v3846_v14, -inf }
 0x2e8   :  { %1429 = vmax.xlane.f32.xlu0 %v1428_v17  ;;  %1432 = vmax.xlane.f32.xlu1 %v1431_v18 }
 0x2ea   :  { %v3852_v20 = vpop.f32.mrb[16].mxu1  ;;  %v3854_v21 = vpop.f32.mrb[12].mxu0 }
 0x2eb   :  { %v3199_v22 = vpop.f32.mrb[17].mxu1  ;;  %v3204_v25 = vpop.f32.mrb[13].mxu0  ;;  %v1434_v26 = vsel %vm1394_vm3, %v3852_v20, -inf  ;;  %v1437_v27 = vsel %vm1394_vm3, %v3854_v21, -inf }
 0x2ec   :  { %1435 = vmax.xlane.f32.xlu0 %v1434_v26  ;;  %1438 = vmax.xlane.f32.xlu1 %v1437_v27 }
 0x2ee   :  { %v3860_v29 = vpop.f32.mrb[18].mxu1 }
 0x2ef   :  { %v3209_v31 = vpop.f32.mrb[19].mxu1  ;;  %v1440_v32 = vsel %vm1394_vm3, %v3860_v29, -inf }
 0x2f0   :  { %1441 = vmax.xlane.f32.xlu1 %v1440_v32 }
 0x301   :  { %2679 = vrot.lane.b32.xlu1 %v3674_v24, %s3513_s8 }
 0x302   :  { %2603 = vrot.lane.b32.xlu0 %v3668_v23, %s3513_s8 }
 0x30b   :  { %v1397_v42 = vpop.xlane.xlu0 %1396 }
 0x30c   :  { %v1443_v44 = vsub.f32 %v3800_v43, %v1397_v42 }
 0x30e   :  { %v1459_v45 = vmul.f32 1.442695, %v1443_v44 }
 0x30f   :  { %v1400_v47 = vpop.xlane.xlu1 %1399 }
 0x310   :  { %3340 = vpow2.f32 %v1459_v45  ;;  %v1444_v48 = vsub.f32 %v3804_v46, %v1400_v47 }
 0x312   :  { %v1461_v50 = vmul.f32 1.442695, %v1444_v48 }
 0x314   :  { %3342 = vpow2.f32 %v1461_v50 }
 0x31a   :  { %v3890_v24 = vpop.eup %3340 }
 0x31b   :  { %3213 = vmatmul.mubr.msk.f32.vlgmr.msra.gmra.mrb[14].mxu0 %vm1394_vm3, %v3890_v24 }
 0x31c   :  { %3221 = vmatpush3.msra.mxu0 %v1692_v19  ;;  %3222 = vmatprep.mubr.msk.f32.mxu0 %vm3509_vm1, %v3507_v10 }
 0x31d   :  { %3230 = vmatprep.subr.mxu0 %v3507_v10 }
 0x31e   :  { %v3897_v23 = vpop.eup %3342 }
 0x31f   :  { %3218 = vmatmul.mubr.msk.f32.vlgmr.msra.gmra.mrb[20].mxu1 %vm1394_vm3, %v3897_v23 }
 0x320   :  { %3226 = vmatpush3.msra.mxu1 %v1768_v28  ;;  %3227 = vmatprep.mubr.msk.f32.mxu1 %vm3509_vm1, %v3507_v10 }
 0x321   :  { %3235 = vmatprep.subr.mxu1 %v3507_v10 }
 0x361   :  { %v1403_v43 = vpop.xlane.xlu0 %1402 }
 0x362   :  { %v1445_v46 = vsub.f32 %v3808_v49, %v1403_v43 }
 0x364   :  { %v1463_v51 = vmul.f32 1.442695, %v1445_v46 }
 0x365   :  { %v1409_v54 = vpop.xlane.xlu1 %1408  ;;  %v1406_v55 = vpop.xlane.xlu0 %1405 }
 0x366   :  { %3344 = vpow2.f32 %v1463_v51  ;;  %v1447_v56 = vsub.f32 %v3814_v53, %v1409_v54  ;;  %v1446_v57 = vsub.f32 %v3812_v52, %v1406_v55 }
 0x368   :  { %v1467_v60 = vmul.f32 1.442695, %v1447_v56  ;;  %v1465_v61 = vmul.f32 1.442695, %v1446_v57 }
 0x369   :  { %v1415_v62 = vpop.xlane.xlu1 %1414  ;;  %v1412_v63 = vpop.xlane.xlu0 %1411 }
 0x36a   :  { %3346 = vpow2.f32 %v1467_v60  ;;  %v1449_v2 = vsub.f32 %v3822_v59, %v1415_v62  ;;  %v1448_v3 = vsub.f32 %v3820_v58, %v1412_v63 }
 0x36b   :  { %3348 = vpow2.f32 %v1465_v61 }
 0x36c   :  { %v1471_v4 = vmul.f32 1.442695, %v1449_v2  ;;  %v1469_v49 = vmul.f32 1.442695, %v1448_v3  ;;  %v1491_v2 = vsel %vm1394_vm3, %v3890_v24, 0.0  ;;  %v1494_v3 = vsel %vm1394_vm3, %v3897_v23, 0.0 }
 0x36d   :  { %v1421_v5 = vpop.xlane.xlu1 %1420  ;;  %v1418_v8 = vpop.xlane.xlu0 %1417 }
 0x36e   :  { %3350 = vpow2.f32 %v1471_v4  ;;  %v1451_v9 = vsub.f32 %v3830_v1, %v1421_v5  ;;  %v1450_v53 = vsub.f32 %v3828_v0, %v1418_v8 }
 0x36f   :  { %3352 = vpow2.f32 %v1469_v49 }
 0x370   :  { %v3345_v52 = vpop.eup %3344  ;;  %v1475_v11 = vmul.f32 1.442695, %v1451_v9  ;;  %v1473_v12 = vmul.f32 1.442695, %v1450_v53 }
 0x371   :  { %v1427_v15 = vpop.xlane.xlu1 %1426  ;;  %3223 = vmatmul.mubr.msk.f32.vlgmr.msra.gmra.mrb[16].mxu0 %vm1394_vm3, %v3345_v52  ;;  %v1424_v59 = vpop.xlane.xlu0 %1423  ;;  %v1497_v58 = vsel %vm1394_vm3, %v3345_v52, 0.0 }
 0x372   :  { %3354 = vpow2.f32 %v1475_v11  ;;  %v1453_v16 = vsub.f32 %v3838_v7, %v1427_v15  ;;  %3231 = vmatpush3.msra.mxu0 %v3862_v30  ;;  %v1452_v17 = vsub.f32 %v3836_v6, %v1424_v59  ;;  %1498 = vadd.xlane.f32.xlu0 %v1497_v58 }
 0x373   :  { %3356 = vpow2.f32 %v1473_v12  ;;  %3232 = vmatprep.mubr.msk.f32.mxu0 %vm3509_vm1, %v3507_v10  ;;  %3240 = vmatprep.subr.mxu0 %v3507_v10 }
 0x374   :  { %v3347_v0 = vpop.eup %3346  ;;  %v1479_v1 = vmul.f32 1.442695, %v1453_v16  ;;  %v1477_v18 = vmul.f32 1.442695, %v1452_v17 }
 0x375   :  { %v3349_v19 = vpop.eup %3348  ;;  %v1433_v22 = vpop.xlane.xlu1 %1432  ;;  %3233 = vmatmul.mubr.msk.f32.vlgmr.msra.gmra.mrb[18].mxu0 %vm1394_vm3, %v3347_v0  ;;  %v1503_v7 = vsel %vm1394_vm3, %v3347_v0, 0.0 }
 0x376   :  { %v1430_v25 = vpop.xlane.xlu0 %1429  ;;  %3358 = vpow2.f32 %v1479_v1  ;;  %v1455_v6 = vsub.f32 %v3846_v14, %v1433_v22  ;;  %3228 = vmatmul.mubr.msk.f32.vlgmr.msra.gmra.mrb[22].mxu1 %vm1394_vm3, %v3349_v19  ;;  %3241 = vmatpush3.msra.mxu0 %v3868_v34  ;;  %v1500_v27 = vsel %vm1394_vm3, %v3349_v19, 0.0 }
 0x377   :  { %v1454_v26 = vsub.f32 %v3844_v13, %v1430_v25  ;;  %3360 = vpow2.f32 %v1477_v18  ;;  %3236 = vmatpush3.msra.mxu1 %v3866_v33  ;;  %1504 = vadd.xlane.f32.xlu0 %v1503_v7 }
 0x378   :  { %v3351_v28 = vpop.eup %3350  ;;  %v1483_v30 = vmul.f32 1.442695, %v1455_v6  ;;  %1501 = vadd.xlane.f32.xlu1 %v1500_v27  ;;  %3237 = vmatprep.mubr.msk.f32.mxu1 %vm3509_vm1, %v3507_v10 }
 0x379   :  { %v1481_v31 = vmul.f32 1.442695, %v1454_v26  ;;  %v3353_v14 = vpop.eup %3352  ;;  %3242 = vmatprep.mubr.msk.f32.mxu0 %vm3509_vm1, %v3507_v10  ;;  %3245 = vmatprep.subr.mxu1 %v3507_v10  ;;  %v1439_v13 = vpop.xlane.xlu1 %1438  ;;  %v1509_v34 = vsel %vm1394_vm3, %v3351_v28, 0.0 }
 0x37a   :  { %v1436_v32 = vpop.xlane.xlu0 %1435  ;;  %3250 = vmatprep.subr.mxu0 %v3507_v10  ;;  %v1457_v33 = vsub.f32 %v3854_v21, %v1439_v13  ;;  %3238 = vmatmul.mubr.msk.f32.vlgmr.msra.gmra.mrb[24].mxu1 %vm1394_vm3, %v3353_v14  ;;  %v1506_v44 = vsel %vm1394_vm3, %v3353_v14, 0.0  ;;  %3362 = vpow2.f32 %v1483_v30 }
 0x37b   :  { %v1456_v42 = vsub.f32 %v3852_v20, %v1436_v32  ;;  %3243 = vmatmul.mubr.msk.f32.vlgmr.msra.gmra.mrb[20].mxu0 %vm1394_vm3, %v3351_v28  ;;  %3246 = vmatpush3.msra.mxu1 %v3870_v35  ;;  %3364 = vpow2.f32 %v1481_v31 }
 0x37c   :  { %v3355_v45 = vpop.eup %3354  ;;  %v1487_v47 = vmul.f32 1.442695, %v1457_v33  ;;  %3251 = vmatpush3.msra.mxu0 %v3872_v36  ;;  %1510 = vadd.xlane.f32.xlu1 %v1509_v34 }
 0x37d   :  { %v1485_v48 = vmul.f32 1.442695, %v1456_v42  ;;  %v3357_v50 = vpop.eup %3356  ;;  %1507 = vadd.xlane.f32.xlu0 %v1506_v44  ;;  %3247 = vmatprep.mubr.msk.f32.mxu1 %vm3509_vm1, %v3507_v10  ;;  %v1442_v20 = vpop.xlane.xlu1 %1441  ;;  %v1515_v35 = vsel %vm1394_vm3, %v3355_v45, 0.0 }
 0x37e   :  { %3252 = vmatprep.mubr.msk.f32.mxu0 %vm3509_vm1, %v3507_v10  ;;  %3255 = vmatprep.subr.mxu1 %v3507_v10  ;;  %v1458_v21 = vsub.f32 %v3860_v29, %v1442_v20  ;;  %3366 = vpow2.f32 %v1487_v47  ;;  %v1512_v36 = vsel %vm1394_vm3, %v3357_v50, 0.0  ;;  %v2604_v57 = vpop.permute.xlu0 %2603 }
 0x37f   :  { %3260 = vmatprep.subr.mxu0 %v3507_v10  ;;  %3248 = vmatmul.mubr.msk.f32.vlgmr.msra.gmra.mrb[26].mxu1 %vm1394_vm3, %v3357_v50  ;;  %3368 = vpow2.f32 %v1485_v48  ;;  %v2878_v48 = vld [vmem:[#allocation7] sm:$0xff]  ;;  %v2879_v50 = vld [vmem:[#allocation7 + $0x8] sm:$0xff] }
 0x380   :  { %v3359_v43 = vpop.eup %3358  ;;  %v1489_v46 = vmul.f32 1.442695, %v1458_v21  ;;  %3253 = vmatmul.mubr.msk.f32.vlgmr.msra.gmra.mrb[22].mxu0 %vm1394_vm3, %v3355_v45  ;;  %3256 = vmatpush3.msra.mxu1 %v3874_v37 }
 0x381   :  { %v3361_v51 = vpop.eup %3360  ;;  %3261 = vmatpush3.msra.mxu0 %v3876_v38  ;;  %1516 = vadd.xlane.f32.xlu1 %v1515_v35  ;;  %v1521_v29 = vsel %vm1394_vm3, %v3359_v43, 0.0  ;;  %v2680_v63 = vpop.permute.xlu1 %2679 }
 0x382   :  { %1513 = vadd.xlane.f32.xlu0 %v1512_v36  ;;  %3257 = vmatprep.mubr.msk.f32.mxu1 %vm3509_vm1, %v3507_v10  ;;  %3370 = vpow2.f32 %v1489_v46  ;;  %v1518_v37 = vsel %vm1394_vm3, %v3361_v51, 0.0 }
 0x383   :  { %3262 = vmatprep.mubr.msk.f32.mxu0 %vm3509_vm1, %v3507_v10  ;;  %3265 = vmatprep.subr.mxu1 %v3507_v10 }
 0x384   :  { %3270 = vmatprep.subr.mxu0 %v3507_v10  ;;  %3258 = vmatmul.mubr.msk.f32.vlgmr.msra.gmra.mrb[28].mxu1 %vm1394_vm3, %v3361_v51  ;;  %v3363_v38 = vpop.eup %3362 }
 0x385   :  { %3263 = vmatmul.mubr.msk.f32.vlgmr.msra.gmra.mrb[24].mxu0 %vm1394_vm3, %v3359_v43  ;;  %3266 = vmatpush3.msra.mxu1 %v3882_v39  ;;  %v3365_v54 = vpop.eup %3364  ;;  %v1527_v55 = vsel %vm1394_vm3, %v3363_v38, 0.0  ;;  %v3309_v43 = vpack.c.bf16 %v2879_v50, %v2878_v48 }
 0x386   :  { %3271 = vmatpush3.msra.mxu0 %v3884_v40  ;;  %1522 = vadd.xlane.f32.xlu1 %v1521_v29  ;;  %v1524_v39 = vsel %vm1394_vm3, %v3365_v54, 0.0  ;;  %v2880_v29 = vld [vmem:[#allocation7 + $0x10] sm:$0xff] }
 0x387   :  { %1519 = vadd.xlane.f32.xlu0 %v1518_v37  ;;  %3267 = vmatprep.mubr.msk.f32.mxu1 %vm3509_vm1, %v3507_v10  ;;  %v2881_v37 = vld [vmem:[#allocation7 + $0x18] sm:$0xff] }
 0x388   :  { %3272 = vmatprep.mubr.msk.f32.mxu0 %vm3509_vm1, %v3507_v10  ;;  %3275 = vmatprep.subr.mxu1 %v3507_v10  ;;  %v3367_v56 = vpop.eup %3366 }
 0x389   :  { %3280 = vmatprep.subr.mxu0 %v3507_v10  ;;  %3268 = vmatmul.mubr.msk.f32.vlgmr.msra.gmra.mrb[30].mxu1 %vm1394_vm3, %v3365_v54  ;;  %v3369_v40 = vpop.eup %3368  ;;  %v1533_v60 = vsel %vm1394_vm3, %v3367_v56, 0.0 }
 0x38a   :  { %3273 = vmatmul.mubr.msk.f32.vlgmr.msra.gmra.mrb[26].mxu0 %vm1394_vm3, %v3363_v38  ;;  %3276 = vmatpush3.msra.mxu1 %v3886_v41  ;;  %v1530_v61 = vsel %vm1394_vm3, %v3369_v40, 0.0 }
 0x38b   :  { %3281 = vmatpush3.msra.mxu0 %v2604_v57  ;;  %1528 = vadd.xlane.f32.xlu1 %v1527_v55 }
 0x38c   :  { %1525 = vadd.xlane.f32.xlu0 %v1524_v39  ;;  %3277 = vmatprep.mubr.msk.f32.mxu1 %vm3509_vm1, %v3507_v10  ;;  %v3371_v62 = vpop.eup %3370 }
 0x38d   :  { %3282 = vmatprep.mubr.msk.f32.mxu0 %vm3509_vm1, %v3507_v10  ;;  %3285 = vmatprep.subr.mxu1 %v3507_v10  ;;  %v1536_v41 = vsel %vm1394_vm3, %v3371_v62, 0.0 }
 0x38e   :  { %3278 = vmatmul.mubr.msk.f32.vlgmr.msra.gmra.mrb[32].mxu1 %vm1394_vm3, %v3369_v40  ;;  %3283 = vmatmul.mubr.msk.f32.vlgmr.msra.gmra.mrb[28].mxu0 %vm1394_vm3, %v3367_v56  ;;  %v3313_v56 = vpack.c.bf16 %v2881_v37, %v2880_v29 }
 0x38f   :  { %3286 = vmatpush3.msra.mxu1 %v2680_v63  ;;  %1534 = vadd.xlane.f32.xlu1 %v1533_v60 }
 0x390   :  { %1531 = vadd.xlane.f32.xlu0 %v1530_v61  ;;  %3287 = vmatprep.mubr.msk.f32.mxu1 %vm3509_vm1, %v3507_v10 }
 0x391   :  { %3310 = vmatprep.subr.bf16.mxu0 %v3309_v43 }
 0x392   :  { %3288 = vmatmul.mubr.msk.f32.vlgmr.msra.gmra.mrb[34].mxu1 %vm1394_vm3, %v3371_v62  ;;  %3312 = vmatpush3.bf16.msra.mxu0 %v3309_v43 }
 0x393   :  { %1492 = vadd.xlane.f32.xlu1 %v1491_v2  ;;  %3314 = vmatprep.subr.bf16.mxu0 %v3313_v56 }
 0x394   :  { %1537 = vadd.xlane.f32.xlu0 %v1536_v41 }
 0x396   :  { %3316 = vmatpush3.bf16.msra.mxu0 %v3313_v56 }
 0x398   :  { %1495 = vadd.xlane.f32.xlu0 %v1494_v3 }
 0x3ee   :  { %v3994_v4 = vpop.f32.mrb[14].mxu0 }
 0x3ef   :  { %v3214_v49 = vpop.f32.mrb[15].mxu0 }
 0x3f2   :  { %v3996_v5 = vpop.f32.mrb[20].mxu1 }
 0x3f3   :  { %v3219_v8 = vpop.f32.mrb[21].mxu1 }
 0x3ff   :  { %v1499_v10 = vpop.xlane.xlu0 %1498 }
 0x400   :  { %3372 = vrcp.f32 %v1499_v10 }
 0x404   :  { %v1505_v9 = vpop.xlane.xlu0 %1504 }
 0x405   :  { %v1502_v53 = vpop.xlane.xlu1 %1501  ;;  %3374 = vrcp.f32 %v1505_v9 }
 0x406   :  { %3376 = vrcp.f32 %v1502_v53 }
 0x409   :  { %v1511_v11 = vpop.xlane.xlu1 %1510 }
 0x40a   :  { %v1508_v52 = vpop.xlane.xlu0 %1507  ;;  %v3373_v15 = vpop.eup %3372 }
 0x40b   :  { %3378 = vrcp.f32 %v1508_v52 }
 0x40c   :  { %3380 = vrcp.f32 %v1511_v11 }
 0x40e   :  { %v1517_v12 = vpop.xlane.xlu1 %1516 }
 0x40f   :  { %v1514_v24 = vpop.xlane.xlu0 %1513  ;;  %v3375_v0 = vpop.eup %3374 }
 0x410   :  { %3382 = vrcp.f32 %v1514_v24  ;;  %v3377_v18 = vpop.eup %3376 }
 0x411   :  { %3384 = vrcp.f32 %v1517_v12 }
 0x413   :  { %v1523_v17 = vpop.xlane.xlu1 %1522 }
 0x414   :  { %v1520_v59 = vpop.xlane.xlu0 %1519 }
 0x415   :  { %v3379_v28 = vpop.eup %3378  ;;  %3386 = vrcp.f32 %v1520_v59 }
 0x416   :  { %v3381_v31 = vpop.eup %3380  ;;  %3388 = vrcp.f32 %v1523_v17 }
 0x418   :  { %v1529_v27 = vpop.xlane.xlu1 %1528 }
 0x419   :  { %v1526_v26 = vpop.xlane.xlu0 %1525 }
 0x41a   :  { %v3383_v44 = vpop.eup %3382  ;;  %3390 = vrcp.f32 %v1526_v26 }
 0x41b   :  { %v3385_v20 = vpop.eup %3384  ;;  %3392 = vrcp.f32 %v1529_v27 }
 0x41c   :  { %v1535_v45 = vpop.xlane.xlu1 %1534 }
 0x41d   :  { %v1532_v42 = vpop.xlane.xlu0 %1531  ;;  %3394 = vrcp.f32 %v1535_v45 }
 0x41e   :  { %3396 = vrcp.f32 %v1532_v42 }
 0x41f   :  { %v3387_v38 = vpop.eup %3386 }
 0x420   :  { %v3389_v39 = vpop.eup %3388 }
 0x421   :  { %v1538_v54 = vpop.xlane.xlu0 %1537 }
 0x422   :  { %3398 = vrcp.f32 %v1538_v54 }
 0x424   :  { %v3391_v63 = vpop.eup %3390 }
 0x425   :  { %v3393_v2 = vpop.eup %3392 }
 0x427   :  { %v3395_v53 = vpop.eup %3394 }
 0x428   :  { %v3397_v52 = vpop.eup %3396 }
 0x444   :  { %v1763_v23 = vpop.f32.mrb[16].mxu0 }
 0x445   :  { %v2789_v58 = vmul.f32 %v3373_v15, %v1763_v23  ;;  %v3224_v16 = vpop.f32.mrb[17].mxu0 }
 0x447   :  { %2805 = vrot.lane.b32.xlu1 %v2789_v58, %s3514_s9  ;;  %v3399_v58 = vpop.eup %3398 }
 0x448   :  { %v1915_v1 = vpop.f32.mrb[18].mxu0 }
 0x449   :  { %v1839_v19 = vpop.f32.mrb[22].mxu1  ;;  %v2791_v22 = vmul.f32 %v3375_v0, %v1915_v1  ;;  %v3234_v25 = vpop.f32.mrb[19].mxu0 }
 0x44a   :  { %v2790_v7 = vmul.f32 %v3377_v18, %v1839_v19  ;;  %v3229_v6 = vpop.f32.mrb[23].mxu1  ;;  %v1493_v1 = vpop.xlane.xlu1 %1492 }
 0x44b   :  { %2813 = vrot.lane.b32.xlu1 %v2791_v22, %s3501_s28  ;;  %v1496_v19 = vpop.xlane.xlu0 %1495  ;;  %3400 = vrcp.f32 %v1493_v1 }
 0x44c   :  { %2807 = vrot.lane.b32.xlu0 %v2790_v7, %s3514_s9  ;;  %3402 = vrcp.f32 %v1496_v19 }
 0x44d   :  { %v1991_v30 = vpop.f32.mrb[24].mxu1 }
 0x44e   :  { %v2792_v14 = vmul.f32 %v3379_v28, %v1991_v30  ;;  %v2067_v13 = vpop.f32.mrb[20].mxu0  ;;  %v3239_v32 = vpop.f32.mrb[25].mxu1 }
 0x44f   :  { %v2793_v34 = vmul.f32 %v3381_v31, %v2067_v13  ;;  %v3244_v33 = vpop.f32.mrb[21].mxu0 }
 0x450   :  { %2815 = vrot.lane.b32.xlu1 %v2792_v14, %s3501_s28 }
 0x451   :  { %2821 = vrot.lane.b32.xlu0 %v2793_v34, %s3515_s10 }
 0x452   :  { %v2143_v47 = vpop.f32.mrb[26].mxu1 }
 0x453   :  { %v2794_v21 = vmul.f32 %v3383_v44, %v2143_v47  ;;  %v2219_v35 = vpop.f32.mrb[22].mxu0  ;;  %v3249_v36 = vpop.f32.mrb[27].mxu1 }
 0x454   :  { %v2795_v46 = vmul.f32 %v3385_v20, %v2219_v35  ;;  %v3254_v51 = vpop.f32.mrb[23].mxu0 }
 0x455   :  { %2823 = vrot.lane.b32.xlu1 %v2794_v21, %s3515_s10  ;;  %v3401_v28 = vpop.eup %3400 }
 0x456   :  { %2829 = vrot.lane.b32.xlu0 %v2795_v46, %s3516_s11  ;;  %v2787_v14 = vmul.f32 %v3401_v28, %v3994_v4  ;;  %v3403_v13 = vpop.eup %3402 }
 0x457   :  { %v2295_v55 = vpop.f32.mrb[28].mxu1  ;;  %v2788_v44 = vmul.f32 %v3403_v13, %v3996_v5 }
 0x458   :  { %v2796_v40 = vmul.f32 %v3387_v38, %v2295_v55  ;;  %v2371_v57 = vpop.f32.mrb[24].mxu0  ;;  %v3259_v60 = vpop.f32.mrb[29].mxu1  ;;  %v3040_v38 = vld [vmem:[%s4037_s3] ss:$0 sm:$0xff] }
 0x459   :  { %v2797_v61 = vmul.f32 %v3389_v39, %v2371_v57  ;;  %v3264_v62 = vpop.f32.mrb[25].mxu0 }
 0x45a   :  { %2831 = vrot.lane.b32.xlu1 %v2796_v40, %s3516_s11 }
 0x45b   :  { %2837 = vrot.lane.b32.xlu0 %v2797_v61, %s3517_s12 }
 0x45c   :  { %v2447_v41 = vpop.f32.mrb[30].mxu1 }
 0x45d   :  { %v2798_v3 = vmul.f32 %v3391_v63, %v2447_v41  ;;  %v2523_v49 = vpop.f32.mrb[26].mxu0  ;;  %v3269_v8 = vpop.f32.mrb[31].mxu1 }
 0x45e   :  { %v2799_v10 = vmul.f32 %v3393_v2, %v2523_v49  ;;  %v3274_v9 = vpop.f32.mrb[27].mxu0 }
 0x45f   :  { %2839 = vrot.lane.b32.xlu1 %v2798_v3, %s3517_s12 }
 0x460   :  { %2845 = vrot.lane.b32.xlu0 %v2799_v10, %s3518_s1 }
 0x461   :  { %v2599_v11 = vpop.f32.mrb[32].mxu1  ;;  %v2675_v24 = vpop.f32.mrb[28].mxu0 }
 0x462   :  { %v2800_v12 = vmul.f32 %v3397_v52, %v2599_v11  ;;  %v2801_v15 = vmul.f32 %v3395_v53, %v2675_v24  ;;  %v3279_v23 = vpop.f32.mrb[33].mxu1  ;;  %v3284_v59 = vpop.f32.mrb[29].mxu0 }
 0x464   :  { %2853 = vrot.lane.b32.xlu0 %v2801_v15, %s3519_s13  ;;  %2847 = vrot.lane.b32.xlu1 %v2800_v12, %s3518_s1 }
 0x465   :  { %v2751_v16 = vpop.f32.mrb[34].mxu1 }
 0x466   :  { %v2802_v17 = vmul.f32 %v3399_v58, %v2751_v16  ;;  %v3289_v0 = vpop.f32.mrb[35].mxu1 }
 0x468   :  { %2855 = vrot.lane.b32.xlu1 %v2802_v17, %s3519_s13 }
 0x4b9   :  { %v2806_v18 = vpop.permute.xlu1 %2805 }
 0x4ba   :  { %v2859_v32 = vsel %vm179_vm2, %v2787_v14, %v2806_v18 }
 0x4bd   :  { %v2814_v22 = vpop.permute.xlu1 %2813 }
 0x4be   :  { %v2808_v25 = vpop.permute.xlu0 %2807  ;;  %v2861_v33 = vsel %vm1394_vm3, %v2859_v32, %v2814_v22 }
 0x4bf   :  { %v2860_v4 = vsel %vm179_vm2, %v2788_v44, %v2808_v25 }
 0x4c2   :  { %v2816_v7 = vpop.permute.xlu1 %2815 }
 0x4c3   :  { %v2822_v6 = vpop.permute.xlu0 %2821  ;;  %v2862_v50 = vsel %vm1394_vm3, %v2860_v4, %v2816_v7 }
 0x4c4   :  { %v2864_v45 = vsel %vm2863_vm4, %v2861_v33, %v2822_v6 }
 0x4c7   :  { %v2824_v26 = vpop.permute.xlu1 %2823 }
 0x4c8   :  { %v2830_v27 = vpop.permute.xlu0 %2829  ;;  %v2865_v36 = vsel %vm2863_vm4, %v2862_v50, %v2824_v26 }
 0x4c9   :  { %v2867_v47 = vsel %vm2866_vm5, %v2864_v45, %v2830_v27 }
 0x4cc   :  { %v2832_v30 = vpop.permute.xlu1 %2831 }
 0x4cd   :  { %v2838_v31 = vpop.permute.xlu0 %2837  ;;  %v2868_v5 = vsel %vm2866_vm5, %v2865_v36, %v2832_v30 }
 0x4ce   :  { %v2870_v48 = vsel %vm2869_vm6, %v2867_v47, %v2838_v31 }
 0x4d1   :  { %v2840_v34 = vpop.permute.xlu1 %2839 }
 0x4d2   :  { %v2846_v42 = vpop.permute.xlu0 %2845  ;;  %v2871_v46 = vsel %vm2869_vm6, %v2868_v5, %v2840_v34 }
 0x4d3   :  { %v2873_v20 = vsel %vm2872_vm7, %v2870_v48, %v2846_v42 }
 0x4d6   :  { %v2848_v21 = vpop.permute.xlu1 %2847  ;;  %v2854_v35 = vpop.permute.xlu0 %2853 }
 0x4d7   :  { %v2876_v43 = vsel %vm2875_vm8, %v2873_v20, %v2854_v35  ;;  %v2874_v51 = vsel %vm2872_vm7, %v2871_v46, %v2848_v21 }
 0x4d8   :  { %3298 = vmatprep.mubr.msk.f32.mxu0 %vm65_vm0, %v2876_v43 }
 0x4da   :  { %v2856_v29 = vpop.permute.xlu1 %2855 }
 0x4db   :  { %v2877_v37 = vsel %vm2875_vm8, %v2874_v51, %v2856_v29 }
 0x4dc   :  { %3299 = vmatmul.mubr.msk.f32.vlgmr.msra.gmra.mrb[30].mxu0 %vm65_vm0, %v2877_v37 }
 0x5af   :  { %v3300_v54 = vpop.f32.mrb[30].mxu0 }
 0x5b0   :  { %v2967_v55 = vadd.f32 %v3300_v54, %v3040_v38  ;;  %v2961_v56 = vpop.f32.mrb[31].mxu0 }
 0x5b1   :  { %v2962_v39 = vadd.f32 %v3040_v38, %v2961_v56 }
 0x5b2   :  { %2971 = vst.msk [vmem:[#allocation8 + $0x8] sm:$0xff] %vm65_vm0, %v2967_v55 }
 0x5b3   :  { %2970 = vst.msk [vmem:[#allocation8] sm:$0xff] %vm65_vm0, %v2962_v39 }
 0x5b4   :  { %3481 = shalt.err (!%p3478_p0)
}
 0x5b5   :  { %s3482_s21 = scalar_lea.hbm %s4038_s4, 256 }
 0x5b6   :  { %p3483_p1 = scmp.ne.s32.totalorder %s4038_s4, %s3482_s21  ;;  %p3486_p2 = scmp.lt.u32.totalorder %s3482_s21, %s4038_s4 }
 0x5b8   :  { %p3488_p3 = pnand %p3486_p2, %p3483_p1 }
 0x5ba   :  { %3491 = shalt.err (!%p3488_p3)
}
 0x5bb   :  { %2983 = dma.vmem_to_hbm [thread:$0]  %s2978_s17, 256, %s4038_s4, [#allocation4], %s3500_s27, %s3500_s27, %s3501_s28  }
 0x5bc   :  { %3496 = dma.done.wait [#allocation4], 256  }
 0x5bd   :  { %3497 = vsyncadd [#allocation4], 4294967040 }
 0x5be   :  { %2987 = vsyncpa [#allocation3], 1 }
 0x5bf   :  { %2988 = vsyncpa [#allocation6], 1 }
 0x5c0   :  { %2989 = vsyncpa [#allocation4], 1 }

</bundles_post_ra>
